<compile_context>
chip_gen: v6e
topology: v6e:2x2x1
jax: 0.10.0
libtpu: 0.0.40
codegen_flags: <defaults>
</compile_context>

<pallas_src>
import functools
import math

import numpy as np
import jax
import jax.numpy as jnp
from jax import lax
from jax.experimental import pallas as pl
from jax.experimental.pallas import tpu as pltpu


_K = 5                     # conv kernel size
_PAD = (_K - 1) // 2       # 'same' padding = 2

_CIN = 7
_CIN_PADS = [8, 16, 16, 16]      # padded-to-8 input channels per layer
_COUT_PADS = [16, 16, 16, 8]     # padded-to-8 output channels per layer


# ---------------------------------------------------------------------------
# Kernel
# ---------------------------------------------------------------------------
def _make_kernel(L, compute_dtype):
    """Build the fused 4-layer conv kernel for sample length L."""

    def kernel(x_ref, w1_ref, b1_ref, w2_ref, b2_ref, w3_ref, b3_ref,
               w4_ref, b4_ref, o_ref):
        # x_ref: (8, BL) f32, lane j = sample*L + position.  w*_ref: (K, Cout_pad, Cin_pad).
        # b*_ref: (Cout_pad, 1) f32.  o_ref: (4, BL) f32.
        bl = x_ref.shape[-1]

        # Hoisted per-tap boundary masks, generated in-kernel (no HBM mask input).
        pos = lax.broadcasted_iota(jnp.int32, (1, bl), 1) % L      # position within sample
        masks = {}
        for k in range(_K):
            d = k - _PAD
            if d == 0:
                continue
            valid = (pos < (L - d)) if d > 0 else (pos >= (-d))
            masks[k] = valid.astype(compute_dtype)                 # (1, BL) 0/1

        def conv(x, w_ref, b_ref):
            # Per-tap accumulated dots — no im2col patch matrix is materialized.
            acc = jnp.dot(w_ref[_PAD], x, preferred_element_type=jnp.float32)
            for k in range(_K):
                d = k - _PAD
                if d == 0:
                    continue
                shifted = pltpu.roll(x, shift=(-d) % bl, axis=1)   # XLU lane rotate
                acc = acc + jnp.dot(w_ref[k], shifted * masks[k],
                                    preferred_element_type=jnp.float32)
            return acc + b_ref[...]

        x = x_ref[...].astype(compute_dtype)                               # (8,  BL)
        h = jnp.maximum(conv(x, w1_ref, b1_ref), 0.0).astype(compute_dtype)  # (16, BL)
        h = jnp.maximum(conv(h, w2_ref, b2_ref), 0.0).astype(compute_dtype)  # (16, BL)
        h = jnp.maximum(conv(h, w3_ref, b3_ref), 0.0).astype(compute_dtype)  # (16, BL)
        y = conv(h, w4_ref, b4_ref)                                          # (8,  BL)
        # Only the 4 real output channels go through sigmoid and get written back.
        o_ref[...] = jax.nn.sigmoid(y[:4, :]).astype(o_ref.dtype)

    return kernel


# ---------------------------------------------------------------------------
# Tile / VMEM sizing
# ---------------------------------------------------------------------------
@functools.lru_cache(maxsize=None)
def _vmem_budget_bytes():
    """~3/4 of physical VMEM (capped at 100 MiB); conservative fallback if unknown."""
    cap = 64 * 1024 * 1024                      # v7x-safe fallback
    try:
        cap = int(getattr(pltpu.get_tpu_info(), "vmem_capacity_bytes", cap))
    except Exception:
        pass
    return min((cap * 3) // 4, 100 * 1024 * 1024)


def _choose_block_batch(N, L, target_lanes):
    """Per-step batch B with (B*L) % 128 == 0, B*L ~ target_lanes, n_blocks >= 2 if possible."""
    unit = 128 // math.gcd(L, 128)              # smallest B making B*L lane-aligned
    total_units = -(-N // unit)                 # units needed to cover N
    want = max(1, target_lanes // (unit * L))
    if total_units >= 2:
        # keep at least 2 grid steps so ("parallel",) can use both TCs on v7x
        want = min(want, max(1, total_units // 2))
    want = min(want, total_units)
    return unit * want


# ---------------------------------------------------------------------------
# Weight prep
# ---------------------------------------------------------------------------
def _prep_layer(w, b, cin_pad, cout_pad, w_dtype):
    """PyTorch (Cout, Cin, K), (Cout,) -> per-tap (K, Cout_pad, Cin_pad), (Cout_pad, 1)."""
    cout, cin, k = w.shape
    wt = jnp.transpose(w.astype(jnp.float32), (2, 0, 1))            # (K, Cout, Cin)
    wt = jnp.pad(wt, ((0, 0), (0, cout_pad - cout), (0, cin_pad - cin)))
    bc = jnp.pad(b.astype(jnp.float32), (0, cout_pad - cout)).reshape(-1, 1)
    return wt.astype(w_dtype), bc


# ---------------------------------------------------------------------------
# Forward
# ---------------------------------------------------------------------------
def _forward_impl(state, params, target_lanes, use_bf16, vmem_limit_bytes):
    N, cin, L = state.shape
    assert cin == _CIN
    (w1, b1), (w2, b2), (w3, b3), (w4, b4) = params

    compute_dtype = jnp.bfloat16 if use_bf16 else jnp.float32

    B = _choose_block_batch(N, L, target_lanes)
    BL = B * L
    n_blocks = -(-N // B)
    Npad = n_blocks * B
    cin_pad0 = _CIN_PADS[0]

    # Pad batch (whole number of blocks) and channels (7 -> 8), then flatten batch
    # into the lane axis: (Npad, 8, L) -> (8, Npad*L).
    xp = jnp.pad(state.astype(jnp.float32),
                 ((0, Npad - N), (0, cin_pad0 - cin), (0, 0)))
    x_flat = jnp.transpose(xp, (1, 0, 2)).reshape(cin_pad0, Npad * L)

    w1k, b1c = _prep_layer(w1, b1, _CIN_PADS[0], _COUT_PADS[0], compute_dtype)
    w2k, b2c = _prep_layer(w2, b2, _CIN_PADS[1], _COUT_PADS[1], compute_dtype)
    w3k, b3c = _prep_layer(w3, b3, _CIN_PADS[2], _COUT_PADS[2], compute_dtype)
    w4k, b4c = _prep_layer(w4, b4, _CIN_PADS[3], _COUT_PADS[3], compute_dtype)

    def full_spec(shape):
        zeros = (0,) * len(shape)
        return pl.BlockSpec(shape, lambda i: zeros)

    kernel = _make_kernel(L, compute_dtype)

    out_flat = pl.pallas_call(
        kernel,
        out_shape=jax.ShapeDtypeStruct((4, Npad * L), jnp.float32),
        grid_spec=pltpu.PrefetchScalarGridSpec(
            num_scalar_prefetch=0,
            grid=(n_blocks,),
            in_specs=[
                pl.BlockSpec((cin_pad0, BL), lambda i: (0, i)),   # B samples per step
                full_spec(w1k.shape), full_spec(b1c.shape),
                full_spec(w2k.shape), full_spec(b2c.shape),
                full_spec(w3k.shape), full_spec(b3c.shape),
                full_spec(w4k.shape), full_spec(b4c.shape),
            ],
            out_specs=pl.BlockSpec((4, BL), lambda i: (0, i)),
        ),
        compiler_params=pltpu.CompilerParams(
            dimension_semantics=("parallel",),
            vmem_limit_bytes=vmem_limit_bytes),
    )(x_flat, w1k, b1c, w2k, b2c, w3k, b3c, w4k, b4c)

    # TODO(synk): for very large L a 3-D (Npad, 4, L) out BlockSpec would avoid this
    # post-kernel transpose copy; kept 2-D here for simplicity (fused under the same jit).
    out = out_flat.reshape(4, Npad, L).transpose(1, 0, 2)[:N]
    return out


_forward_jit = jax.jit(_forward_impl, static_argnums=(2, 3, 4))


def rna_cnn_policy_forward(state, params, *, target_lanes=None, use_bf16=False):
    """state: (N, 7, L) float32 (NCL, like PyTorch Conv1d). Returns (N, 4, L) float32."""
    budget = _vmem_budget_bytes()
    if target_lanes is None:
        # Bigger tiles on 128 MiB-VMEM chips (v5e/v6e), v7x-safe otherwise.
        target_lanes = 32768 if budget >= 80 * 1024 * 1024 else 16384
    # ~1 KiB/lane worst-case live VMEM (I/O double buffers + f32 intermediates + masks).
    target_lanes = min(target_lanes, max(128, (budget // 1024) // 128 * 128))
    return _forward_jit(state, params, int(target_lanes), bool(use_bf16), int(budget))


# ---------------------------------------------------------------------------
# Params / reference
# ---------------------------------------------------------------------------
def init_params(key):
    """Deterministic init matching PyTorch Conv1d shapes (Cout, Cin, K) / (Cout,)."""
    shapes = [(15, 7, 5), (10, 15, 5), (10, 10, 5), (4, 10, 5)]
    params = []
    for (cout, cin, k) in shapes:
        key, kw, kb = jax.random.split(key, 3)
        bound = 1.0 / np.sqrt(cin * k)   # PyTorch default uniform bound
        w = jax.random.uniform(kw, (cout, cin, k), jnp.float32, -bound, bound)
        b = jax.random.uniform(kb, (cout,), jnp.float32, -bound, bound)
        params.append((w, b))
    return params


def reference_forward(state, params):
    """Pure-JAX reference (lax conv) mirroring the PyTorch forward."""
    x = state
    acts = [jax.nn.relu, jax.nn.relu, jax.nn.relu, jax.nn.sigmoid]
    for (w, b), act in zip(params, acts):
        y = lax.conv_general_dilated(
            x, w, window_strides=(1,), padding=[(2, 2)],
            dimension_numbers=("NCH", "OIH", "NCH"))
        x = act(y + b[None, :, None])
    return x


if __name__ == "__main__":
    key = jax.random.PRNGKey(0)
    key, kx = jax.random.split(key)
    params = init_params(key)

    # Small sanity shape (NCL with C=7, like the PyTorch module).
    N, C, L = 2, 7, 16
    state = jax.random.normal(kx, (N, C, L), jnp.float32)
    out = jax.block_until_ready(rna_cnn_policy_forward(state, params))
    ref = reference_forward(state, params)
    np.testing.assert_allclose(np.asarray(out), np.asarray(ref), rtol=1e-5, atol=1e-5)

    # Multi-block case: exercises grid > 1 and per-sample boundary masking.
    key, kx2 = jax.random.split(key)
    state2 = jax.random.normal(kx2, (6, 7, 64), jnp.float32)
    out2 = jax.block_until_ready(rna_cnn_policy_forward(state2, params))
    ref2 = reference_forward(state2, params)
    np.testing.assert_allclose(np.asarray(out2), np.asarray(ref2), rtol=1e-5, atol=1e-5)

    print("KERNEL_OK")
</pallas_src>

<mosaic_0001>
module attributes {stable_mosaic.version = 11 : i64} {
  func.func @kernel(%arg0: i32, %arg1: memref<8x128xf32, #tpu.memory_space<vmem>>, %arg2: memref<5x16x8xf32, #tpu.memory_space<vmem>>, %arg3: memref<16x1xf32, #tpu.memory_space<vmem>>, %arg4: memref<5x16x16xf32, #tpu.memory_space<vmem>>, %arg5: memref<16x1xf32, #tpu.memory_space<vmem>>, %arg6: memref<5x16x16xf32, #tpu.memory_space<vmem>>, %arg7: memref<16x1xf32, #tpu.memory_space<vmem>>, %arg8: memref<5x8x16xf32, #tpu.memory_space<vmem>>, %arg9: memref<8x1xf32, #tpu.memory_space<vmem>>, %arg10: memref<4x128xf32, #tpu.memory_space<vmem>>) attributes {dimension_semantics = [#tpu.dimension_semantics<parallel>], iteration_bounds = array<i64: 1>, scalar_prefetch = 0 : i64, scratch_operands = 0 : i64, tpu.core_type = #tpu.core_type<tc>, window_params = [{transform_indices = @transform_0, window_bounds = array<i64: 8, 128>}, {pipeline_mode = #tpu.pipeline_mode<synchronous>, transform_indices = @transform_1, window_bounds = array<i64: 5, 16, 8>}, {pipeline_mode = #tpu.pipeline_mode<synchronous>, transform_indices = @transform_2, window_bounds = array<i64: 16, 1>}, {pipeline_mode = #tpu.pipeline_mode<synchronous>, transform_indices = @transform_3, window_bounds = array<i64: 5, 16, 16>}, {pipeline_mode = #tpu.pipeline_mode<synchronous>, transform_indices = @transform_4, window_bounds = array<i64: 16, 1>}, {pipeline_mode = #tpu.pipeline_mode<synchronous>, transform_indices = @transform_5, window_bounds = array<i64: 5, 16, 16>}, {pipeline_mode = #tpu.pipeline_mode<synchronous>, transform_indices = @transform_6, window_bounds = array<i64: 16, 1>}, {pipeline_mode = #tpu.pipeline_mode<synchronous>, transform_indices = @transform_7, window_bounds = array<i64: 5, 8, 16>}, {pipeline_mode = #tpu.pipeline_mode<synchronous>, transform_indices = @transform_8, window_bounds = array<i64: 8, 1>}, {transform_indices = @transform_9, window_bounds = array<i64: 4, 128>}]} {
    %0 = tpu.iota {dimensions = array<i32: 1>} : vector<1x128xi32>
    %c16_i32 = arith.constant 16 : i32
    %c0_i32 = arith.constant 0 : i32
    %1 = arith.cmpi eq, %c16_i32, %c0_i32 : i32
    %c1_i32 = arith.constant 1 : i32
    %2 = arith.select %1, %c1_i32, %c16_i32 : i32
    %3 = vector.broadcast %2 : i32 to vector<1x128xi32>
    %4 = arith.remsi %0, %3 : vector<1x128xi32>
    %c0_i32_0 = arith.constant 0 : i32
    %5 = vector.broadcast %c0_i32_0 : i32 to vector<1x128xi32>
    %6 = arith.cmpi ne, %4, %5 : vector<1x128xi32>
    %c0_i32_1 = arith.constant 0 : i32
    %7 = vector.broadcast %c0_i32_1 : i32 to vector<1x128xi32>
    %8 = arith.cmpi slt, %4, %7 : vector<1x128xi32>
    %c0_i32_2 = arith.constant 0 : i32
    %9 = arith.cmpi slt, %2, %c0_i32_2 : i32
    %10 = vector.broadcast %9 : i1 to vector<1x128xi1>
    %11 = vector.broadcast %10 : vector<1x128xi1> to vector<1x128xi1>
    %12 = arith.xori %8, %11 : vector<1x128xi1>
    %13 = arith.andi %12, %6 : vector<1x128xi1>
    %14 = vector.broadcast %2 : i32 to vector<1x128xi32>
    %15 = arith.addi %4, %14 : vector<1x128xi32>
    %16 = arith.select %13, %15, %4 : vector<1x128xi1>, vector<1x128xi32>
    %c2_i32 = arith.constant 2 : i32
    %17 = vector.broadcast %c2_i32 : i32 to vector<1x128xi32>
    %18 = arith.cmpi sge, %16, %17 : vector<1x128xi32>
    %19 = arith.extui %18 : vector<1x128xi1> to vector<1x128xi32>
    %20 = arith.sitofp %19 : vector<1x128xi32> to vector<1x128xf32>
    %c1_i32_3 = arith.constant 1 : i32
    %21 = vector.broadcast %c1_i32_3 : i32 to vector<1x128xi32>
    %22 = arith.cmpi sge, %16, %21 : vector<1x128xi32>
    %23 = arith.extui %22 : vector<1x128xi1> to vector<1x128xi32>
    %24 = arith.sitofp %23 : vector<1x128xi32> to vector<1x128xf32>
    %c15_i32 = arith.constant 15 : i32
    %25 = vector.broadcast %c15_i32 : i32 to vector<1x128xi32>
    %26 = arith.cmpi slt, %16, %25 : vector<1x128xi32>
    %27 = arith.extui %26 : vector<1x128xi1> to vector<1x128xi32>
    %28 = arith.sitofp %27 : vector<1x128xi32> to vector<1x128xf32>
    %c14_i32 = arith.constant 14 : i32
    %29 = vector.broadcast %c14_i32 : i32 to vector<1x128xi32>
    %30 = arith.cmpi slt, %16, %29 : vector<1x128xi32>
    %31 = arith.extui %30 : vector<1x128xi1> to vector<1x128xi32>
    %32 = arith.sitofp %31 : vector<1x128xi32> to vector<1x128xf32>
    %c0 = arith.constant 0 : index
    %c0_4 = arith.constant 0 : index
    %33 = vector.load %arg1[%c0, %c0_4] : memref<8x128xf32, #tpu.memory_space<vmem>>, vector<8x128xf32>
    %c2 = arith.constant 2 : index
    %c0_5 = arith.constant 0 : index
    %c0_6 = arith.constant 0 : index
    %34 = vector.load %arg2[%c2, %c0_5, %c0_6] : memref<5x16x8xf32, #tpu.memory_space<vmem>>, vector<1x16x8xf32>
    %35 = vector.shape_cast %34 : vector<1x16x8xf32> to vector<16x8xf32>
    %cst = arith.constant dense<0.000000e+00> : vector<16x128xf32>
    %36 = tpu.matmul %35, %33, %cst {dimension_numbers = #tpu.dot_dimension_numbers<[1], [0], [0], [1], [0, 0, 1, 1], [], []>} : vector<16x8xf32>, vector<8x128xf32>, vector<16x128xf32> -> vector<16x128xf32>
    %c2_i32_7 = arith.constant 2 : i32
    %37 = tpu.dynamic_rotate %33 by %c2_i32_7 dim 1 : vector<8x128xf32>, i32 -> vector<8x128xf32>
    %c0_8 = arith.constant 0 : index
    %c0_9 = arith.constant 0 : index
    %c0_10 = arith.constant 0 : index
    %38 = vector.load %arg2[%c0_8, %c0_9, %c0_10] : memref<5x16x8xf32, #tpu.memory_space<vmem>>, vector<1x16x8xf32>
    %39 = vector.shape_cast %38 : vector<1x16x8xf32> to vector<16x8xf32>
    %40 = vector.broadcast %20 : vector<1x128xf32> to vector<8x128xf32>
    %41 = arith.mulf %37, %40 : vector<8x128xf32>
    %cst_11 = arith.constant dense<0.000000e+00> : vector<16x128xf32>
    %42 = tpu.matmul %39, %41, %cst_11 {dimension_numbers = #tpu.dot_dimension_numbers<[1], [0], [0], [1], [0, 0, 1, 1], [], []>} : vector<16x8xf32>, vector<8x128xf32>, vector<16x128xf32> -> vector<16x128xf32>
    %43 = arith.addf %36, %42 : vector<16x128xf32>
    %c1_i32_12 = arith.constant 1 : i32
    %44 = tpu.dynamic_rotate %33 by %c1_i32_12 dim 1 : vector<8x128xf32>, i32 -> vector<8x128xf32>
    %c1 = arith.constant 1 : index
    %c0_13 = arith.constant 0 : index
    %c0_14 = arith.constant 0 : index
    %45 = vector.load %arg2[%c1, %c0_13, %c0_14] : memref<5x16x8xf32, #tpu.memory_space<vmem>>, vector<1x16x8xf32>
    %46 = vector.shape_cast %45 : vector<1x16x8xf32> to vector<16x8xf32>
    %47 = vector.broadcast %24 : vector<1x128xf32> to vector<8x128xf32>
    %48 = arith.mulf %44, %47 : vector<8x128xf32>
    %cst_15 = arith.constant dense<0.000000e+00> : vector<16x128xf32>
    %49 = tpu.matmul %46, %48, %cst_15 {dimension_numbers = #tpu.dot_dimension_numbers<[1], [0], [0], [1], [0, 0, 1, 1], [], []>} : vector<16x8xf32>, vector<8x128xf32>, vector<16x128xf32> -> vector<16x128xf32>
    %50 = arith.addf %43, %49 : vector<16x128xf32>
    %c127_i32 = arith.constant 127 : i32
    %51 = tpu.dynamic_rotate %33 by %c127_i32 dim 1 : vector<8x128xf32>, i32 -> vector<8x128xf32>
    %c3 = arith.constant 3 : index
    %c0_16 = arith.constant 0 : index
    %c0_17 = arith.constant 0 : index
    %52 = vector.load %arg2[%c3, %c0_16, %c0_17] : memref<5x16x8xf32, #tpu.memory_space<vmem>>, vector<1x16x8xf32>
    %53 = vector.shape_cast %52 : vector<1x16x8xf32> to vector<16x8xf32>
    %54 = vector.broadcast %28 : vector<1x128xf32> to vector<8x128xf32>
    %55 = arith.mulf %51, %54 : vector<8x128xf32>
    %cst_18 = arith.constant dense<0.000000e+00> : vector<16x128xf32>
    %56 = tpu.matmul %53, %55, %cst_18 {dimension_numbers = #tpu.dot_dimension_numbers<[1], [0], [0], [1], [0, 0, 1, 1], [], []>} : vector<16x8xf32>, vector<8x128xf32>, vector<16x128xf32> -> vector<16x128xf32>
    %57 = arith.addf %50, %56 : vector<16x128xf32>
    %c126_i32 = arith.constant 126 : i32
    %58 = tpu.dynamic_rotate %33 by %c126_i32 dim 1 : vector<8x128xf32>, i32 -> vector<8x128xf32>
    %c4 = arith.constant 4 : index
    %c0_19 = arith.constant 0 : index
    %c0_20 = arith.constant 0 : index
    %59 = vector.load %arg2[%c4, %c0_19, %c0_20] : memref<5x16x8xf32, #tpu.memory_space<vmem>>, vector<1x16x8xf32>
    %60 = vector.shape_cast %59 : vector<1x16x8xf32> to vector<16x8xf32>
    %61 = vector.broadcast %32 : vector<1x128xf32> to vector<8x128xf32>
    %62 = arith.mulf %58, %61 : vector<8x128xf32>
    %cst_21 = arith.constant dense<0.000000e+00> : vector<16x128xf32>
    %63 = tpu.matmul %60, %62, %cst_21 {dimension_numbers = #tpu.dot_dimension_numbers<[1], [0], [0], [1], [0, 0, 1, 1], [], []>} : vector<16x8xf32>, vector<8x128xf32>, vector<16x128xf32> -> vector<16x128xf32>
    %64 = arith.addf %57, %63 : vector<16x128xf32>
    %c0_22 = arith.constant 0 : index
    %c0_23 = arith.constant 0 : index
    %65 = vector.load %arg3[%c0_22, %c0_23] : memref<16x1xf32, #tpu.memory_space<vmem>>, vector<16x1xf32>
    %66 = vector.broadcast %65 : vector<16x1xf32> to vector<16x128xf32>
    %67 = arith.addf %64, %66 : vector<16x128xf32>
    %cst_24 = arith.constant 0.000000e+00 : f32
    %68 = vector.broadcast %cst_24 : f32 to vector<16x128xf32>
    %69 = arith.maximumf %67, %68 : vector<16x128xf32>
    %c2_25 = arith.constant 2 : index
    %c0_26 = arith.constant 0 : index
    %c0_27 = arith.constant 0 : index
    %70 = vector.load %arg4[%c2_25, %c0_26, %c0_27] : memref<5x16x16xf32, #tpu.memory_space<vmem>>, vector<1x16x16xf32>
    %71 = vector.shape_cast %70 : vector<1x16x16xf32> to vector<16x16xf32>
    %cst_28 = arith.constant dense<0.000000e+00> : vector<16x128xf32>
    %72 = tpu.matmul %71, %69, %cst_28 {dimension_numbers = #tpu.dot_dimension_numbers<[1], [0], [0], [1], [0, 0, 1, 1], [], []>} : vector<16x16xf32>, vector<16x128xf32>, vector<16x128xf32> -> vector<16x128xf32>
    %c2_i32_29 = arith.constant 2 : i32
    %73 = tpu.dynamic_rotate %69 by %c2_i32_29 dim 1 : vector<16x128xf32>, i32 -> vector<16x128xf32>
    %c0_30 = arith.constant 0 : index
    %c0_31 = arith.constant 0 : index
    %c0_32 = arith.constant 0 : index
    %74 = vector.load %arg4[%c0_30, %c0_31, %c0_32] : memref<5x16x16xf32, #tpu.memory_space<vmem>>, vector<1x16x16xf32>
    %75 = vector.shape_cast %74 : vector<1x16x16xf32> to vector<16x16xf32>
    %76 = vector.broadcast %20 : vector<1x128xf32> to vector<16x128xf32>
    %77 = arith.mulf %73, %76 : vector<16x128xf32>
    %cst_33 = arith.constant dense<0.000000e+00> : vector<16x128xf32>
    %78 = tpu.matmul %75, %77, %cst_33 {dimension_numbers = #tpu.dot_dimension_numbers<[1], [0], [0], [1], [0, 0, 1, 1], [], []>} : vector<16x16xf32>, vector<16x128xf32>, vector<16x128xf32> -> vector<16x128xf32>
    %79 = arith.addf %72, %78 : vector<16x128xf32>
    %c1_i32_34 = arith.constant 1 : i32
    %80 = tpu.dynamic_rotate %69 by %c1_i32_34 dim 1 : vector<16x128xf32>, i32 -> vector<16x128xf32>
    %c1_35 = arith.constant 1 : index
    %c0_36 = arith.constant 0 : index
    %c0_37 = arith.constant 0 : index
    %81 = vector.load %arg4[%c1_35, %c0_36, %c0_37] : memref<5x16x16xf32, #tpu.memory_space<vmem>>, vector<1x16x16xf32>
    %82 = vector.shape_cast %81 : vector<1x16x16xf32> to vector<16x16xf32>
    %83 = vector.broadcast %24 : vector<1x128xf32> to vector<16x128xf32>
    %84 = arith.mulf %80, %83 : vector<16x128xf32>
    %cst_38 = arith.constant dense<0.000000e+00> : vector<16x128xf32>
    %85 = tpu.matmul %82, %84, %cst_38 {dimension_numbers = #tpu.dot_dimension_numbers<[1], [0], [0], [1], [0, 0, 1, 1], [], []>} : vector<16x16xf32>, vector<16x128xf32>, vector<16x128xf32> -> vector<16x128xf32>
    %86 = arith.addf %79, %85 : vector<16x128xf32>
    %c127_i32_39 = arith.constant 127 : i32
    %87 = tpu.dynamic_rotate %69 by %c127_i32_39 dim 1 : vector<16x128xf32>, i32 -> vector<16x128xf32>
    %c3_40 = arith.constant 3 : index
    %c0_41 = arith.constant 0 : index
    %c0_42 = arith.constant 0 : index
    %88 = vector.load %arg4[%c3_40, %c0_41, %c0_42] : memref<5x16x16xf32, #tpu.memory_space<vmem>>, vector<1x16x16xf32>
    %89 = vector.shape_cast %88 : vector<1x16x16xf32> to vector<16x16xf32>
    %90 = vector.broadcast %28 : vector<1x128xf32> to vector<16x128xf32>
    %91 = arith.mulf %87, %90 : vector<16x128xf32>
    %cst_43 = arith.constant dense<0.000000e+00> : vector<16x128xf32>
    %92 = tpu.matmul %89, %91, %cst_43 {dimension_numbers = #tpu.dot_dimension_numbers<[1], [0], [0], [1], [0, 0, 1, 1], [], []>} : vector<16x16xf32>, vector<16x128xf32>, vector<16x128xf32> -> vector<16x128xf32>
    %93 = arith.addf %86, %92 : vector<16x128xf32>
    %c126_i32_44 = arith.constant 126 : i32
    %94 = tpu.dynamic_rotate %69 by %c126_i32_44 dim 1 : vector<16x128xf32>, i32 -> vector<16x128xf32>
    %c4_45 = arith.constant 4 : index
    %c0_46 = arith.constant 0 : index
    %c0_47 = arith.constant 0 : index
    %95 = vector.load %arg4[%c4_45, %c0_46, %c0_47] : memref<5x16x16xf32, #tpu.memory_space<vmem>>, vector<1x16x16xf32>
    %96 = vector.shape_cast %95 : vector<1x16x16xf32> to vector<16x16xf32>
    %97 = vector.broadcast %32 : vector<1x128xf32> to vector<16x128xf32>
    %98 = arith.mulf %94, %97 : vector<16x128xf32>
    %cst_48 = arith.constant dense<0.000000e+00> : vector<16x128xf32>
    %99 = tpu.matmul %96, %98, %cst_48 {dimension_numbers = #tpu.dot_dimension_numbers<[1], [0], [0], [1], [0, 0, 1, 1], [], []>} : vector<16x16xf32>, vector<16x128xf32>, vector<16x128xf32> -> vector<16x128xf32>
    %100 = arith.addf %93, %99 : vector<16x128xf32>
    %c0_49 = arith.constant 0 : index
    %c0_50 = arith.constant 0 : index
    %101 = vector.load %arg5[%c0_49, %c0_50] : memref<16x1xf32, #tpu.memory_space<vmem>>, vector<16x1xf32>
    %102 = vector.broadcast %101 : vector<16x1xf32> to vector<16x128xf32>
    %103 = arith.addf %100, %102 : vector<16x128xf32>
    %cst_51 = arith.constant 0.000000e+00 : f32
    %104 = vector.broadcast %cst_51 : f32 to vector<16x128xf32>
    %105 = arith.maximumf %103, %104 : vector<16x128xf32>
    %c2_52 = arith.constant 2 : index
    %c0_53 = arith.constant 0 : index
    %c0_54 = arith.constant 0 : index
    %106 = vector.load %arg6[%c2_52, %c0_53, %c0_54] : memref<5x16x16xf32, #tpu.memory_space<vmem>>, vector<1x16x16xf32>
    %107 = vector.shape_cast %106 : vector<1x16x16xf32> to vector<16x16xf32>
    %cst_55 = arith.constant dense<0.000000e+00> : vector<16x128xf32>
    %108 = tpu.matmul %107, %105, %cst_55 {dimension_numbers = #tpu.dot_dimension_numbers<[1], [0], [0], [1], [0, 0, 1, 1], [], []>} : vector<16x16xf32>, vector<16x128xf32>, vector<16x128xf32> -> vector<16x128xf32>
    %c2_i32_56 = arith.constant 2 : i32
    %109 = tpu.dynamic_rotate %105 by %c2_i32_56 dim 1 : vector<16x128xf32>, i32 -> vector<16x128xf32>
    %c0_57 = arith.constant 0 : index
    %c0_58 = arith.constant 0 : index
    %c0_59 = arith.constant 0 : index
    %110 = vector.load %arg6[%c0_57, %c0_58, %c0_59] : memref<5x16x16xf32, #tpu.memory_space<vmem>>, vector<1x16x16xf32>
    %111 = vector.shape_cast %110 : vector<1x16x16xf32> to vector<16x16xf32>
    %112 = vector.broadcast %20 : vector<1x128xf32> to vector<16x128xf32>
    %113 = arith.mulf %109, %112 : vector<16x128xf32>
    %cst_60 = arith.constant dense<0.000000e+00> : vector<16x128xf32>
    %114 = tpu.matmul %111, %113, %cst_60 {dimension_numbers = #tpu.dot_dimension_numbers<[1], [0], [0], [1], [0, 0, 1, 1], [], []>} : vector<16x16xf32>, vector<16x128xf32>, vector<16x128xf32> -> vector<16x128xf32>
    %115 = arith.addf %108, %114 : vector<16x128xf32>
    %c1_i32_61 = arith.constant 1 : i32
    %116 = tpu.dynamic_rotate %105 by %c1_i32_61 dim 1 : vector<16x128xf32>, i32 -> vector<16x128xf32>
    %c1_62 = arith.constant 1 : index
    %c0_63 = arith.constant 0 : index
    %c0_64 = arith.constant 0 : index
    %117 = vector.load %arg6[%c1_62, %c0_63, %c0_64] : memref<5x16x16xf32, #tpu.memory_space<vmem>>, vector<1x16x16xf32>
    %118 = vector.shape_cast %117 : vector<1x16x16xf32> to vector<16x16xf32>
    %119 = vector.broadcast %24 : vector<1x128xf32> to vector<16x128xf32>
    %120 = arith.mulf %116, %119 : vector<16x128xf32>
    %cst_65 = arith.constant dense<0.000000e+00> : vector<16x128xf32>
    %121 = tpu.matmul %118, %120, %cst_65 {dimension_numbers = #tpu.dot_dimension_numbers<[1], [0], [0], [1], [0, 0, 1, 1], [], []>} : vector<16x16xf32>, vector<16x128xf32>, vector<16x128xf32> -> vector<16x128xf32>
    %122 = arith.addf %115, %121 : vector<16x128xf32>
    %c127_i32_66 = arith.constant 127 : i32
    %123 = tpu.dynamic_rotate %105 by %c127_i32_66 dim 1 : vector<16x128xf32>, i32 -> vector<16x128xf32>
    %c3_67 = arith.constant 3 : index
    %c0_68 = arith.constant 0 : index
    %c0_69 = arith.constant 0 : index
    %124 = vector.load %arg6[%c3_67, %c0_68, %c0_69] : memref<5x16x16xf32, #tpu.memory_space<vmem>>, vector<1x16x16xf32>
    %125 = vector.shape_cast %124 : vector<1x16x16xf32> to vector<16x16xf32>
    %126 = vector.broadcast %28 : vector<1x128xf32> to vector<16x128xf32>
    %127 = arith.mulf %123, %126 : vector<16x128xf32>
    %cst_70 = arith.constant dense<0.000000e+00> : vector<16x128xf32>
    %128 = tpu.matmul %125, %127, %cst_70 {dimension_numbers = #tpu.dot_dimension_numbers<[1], [0], [0], [1], [0, 0, 1, 1], [], []>} : vector<16x16xf32>, vector<16x128xf32>, vector<16x128xf32> -> vector<16x128xf32>
    %129 = arith.addf %122, %128 : vector<16x128xf32>
    %c126_i32_71 = arith.constant 126 : i32
    %130 = tpu.dynamic_rotate %105 by %c126_i32_71 dim 1 : vector<16x128xf32>, i32 -> vector<16x128xf32>
    %c4_72 = arith.constant 4 : index
    %c0_73 = arith.constant 0 : index
    %c0_74 = arith.constant 0 : index
    %131 = vector.load %arg6[%c4_72, %c0_73, %c0_74] : memref<5x16x16xf32, #tpu.memory_space<vmem>>, vector<1x16x16xf32>
    %132 = vector.shape_cast %131 : vector<1x16x16xf32> to vector<16x16xf32>
    %133 = vector.broadcast %32 : vector<1x128xf32> to vector<16x128xf32>
    %134 = arith.mulf %130, %133 : vector<16x128xf32>
    %cst_75 = arith.constant dense<0.000000e+00> : vector<16x128xf32>
    %135 = tpu.matmul %132, %134, %cst_75 {dimension_numbers = #tpu.dot_dimension_numbers<[1], [0], [0], [1], [0, 0, 1, 1], [], []>} : vector<16x16xf32>, vector<16x128xf32>, vector<16x128xf32> -> vector<16x128xf32>
    %136 = arith.addf %129, %135 : vector<16x128xf32>
    %c0_76 = arith.constant 0 : index
    %c0_77 = arith.constant 0 : index
    %137 = vector.load %arg7[%c0_76, %c0_77] : memref<16x1xf32, #tpu.memory_space<vmem>>, vector<16x1xf32>
    %138 = vector.broadcast %137 : vector<16x1xf32> to vector<16x128xf32>
    %139 = arith.addf %136, %138 : vector<16x128xf32>
    %cst_78 = arith.constant 0.000000e+00 : f32
    %140 = vector.broadcast %cst_78 : f32 to vector<16x128xf32>
    %141 = arith.maximumf %139, %140 : vector<16x128xf32>
    %c2_79 = arith.constant 2 : index
    %c0_80 = arith.constant 0 : index
    %c0_81 = arith.constant 0 : index
    %142 = vector.load %arg8[%c2_79, %c0_80, %c0_81] : memref<5x8x16xf32, #tpu.memory_space<vmem>>, vector<1x8x16xf32>
    %143 = vector.shape_cast %142 : vector<1x8x16xf32> to vector<8x16xf32>
    %cst_82 = arith.constant dense<0.000000e+00> : vector<8x128xf32>
    %144 = tpu.matmul %143, %141, %cst_82 {dimension_numbers = #tpu.dot_dimension_numbers<[1], [0], [0], [1], [0, 0, 1, 1], [], []>} : vector<8x16xf32>, vector<16x128xf32>, vector<8x128xf32> -> vector<8x128xf32>
    %c2_i32_83 = arith.constant 2 : i32
    %145 = tpu.dynamic_rotate %141 by %c2_i32_83 dim 1 : vector<16x128xf32>, i32 -> vector<16x128xf32>
    %c0_84 = arith.constant 0 : index
    %c0_85 = arith.constant 0 : index
    %c0_86 = arith.constant 0 : index
    %146 = vector.load %arg8[%c0_84, %c0_85, %c0_86] : memref<5x8x16xf32, #tpu.memory_space<vmem>>, vector<1x8x16xf32>
    %147 = vector.shape_cast %146 : vector<1x8x16xf32> to vector<8x16xf32>
    %148 = vector.broadcast %20 : vector<1x128xf32> to vector<16x128xf32>
    %149 = arith.mulf %145, %148 : vector<16x128xf32>
    %cst_87 = arith.constant dense<0.000000e+00> : vector<8x128xf32>
    %150 = tpu.matmul %147, %149, %cst_87 {dimension_numbers = #tpu.dot_dimension_numbers<[1], [0], [0], [1], [0, 0, 1, 1], [], []>} : vector<8x16xf32>, vector<16x128xf32>, vector<8x128xf32> -> vector<8x128xf32>
    %151 = arith.addf %144, %150 : vector<8x128xf32>
    %c1_i32_88 = arith.constant 1 : i32
    %152 = tpu.dynamic_rotate %141 by %c1_i32_88 dim 1 : vector<16x128xf32>, i32 -> vector<16x128xf32>
    %c1_89 = arith.constant 1 : index
    %c0_90 = arith.constant 0 : index
    %c0_91 = arith.constant 0 : index
    %153 = vector.load %arg8[%c1_89, %c0_90, %c0_91] : memref<5x8x16xf32, #tpu.memory_space<vmem>>, vector<1x8x16xf32>
    %154 = vector.shape_cast %153 : vector<1x8x16xf32> to vector<8x16xf32>
    %155 = vector.broadcast %24 : vector<1x128xf32> to vector<16x128xf32>
    %156 = arith.mulf %152, %155 : vector<16x128xf32>
    %cst_92 = arith.constant dense<0.000000e+00> : vector<8x128xf32>
    %157 = tpu.matmul %154, %156, %cst_92 {dimension_numbers = #tpu.dot_dimension_numbers<[1], [0], [0], [1], [0, 0, 1, 1], [], []>} : vector<8x16xf32>, vector<16x128xf32>, vector<8x128xf32> -> vector<8x128xf32>
    %158 = arith.addf %151, %157 : vector<8x128xf32>
    %c127_i32_93 = arith.constant 127 : i32
    %159 = tpu.dynamic_rotate %141 by %c127_i32_93 dim 1 : vector<16x128xf32>, i32 -> vector<16x128xf32>
    %c3_94 = arith.constant 3 : index
    %c0_95 = arith.constant 0 : index
    %c0_96 = arith.constant 0 : index
    %160 = vector.load %arg8[%c3_94, %c0_95, %c0_96] : memref<5x8x16xf32, #tpu.memory_space<vmem>>, vector<1x8x16xf32>
    %161 = vector.shape_cast %160 : vector<1x8x16xf32> to vector<8x16xf32>
    %162 = vector.broadcast %28 : vector<1x128xf32> to vector<16x128xf32>
    %163 = arith.mulf %159, %162 : vector<16x128xf32>
    %cst_97 = arith.constant dense<0.000000e+00> : vector<8x128xf32>
    %164 = tpu.matmul %161, %163, %cst_97 {dimension_numbers = #tpu.dot_dimension_numbers<[1], [0], [0], [1], [0, 0, 1, 1], [], []>} : vector<8x16xf32>, vector<16x128xf32>, vector<8x128xf32> -> vector<8x128xf32>
    %165 = arith.addf %158, %164 : vector<8x128xf32>
    %c126_i32_98 = arith.constant 126 : i32
    %166 = tpu.dynamic_rotate %141 by %c126_i32_98 dim 1 : vector<16x128xf32>, i32 -> vector<16x128xf32>
    %c4_99 = arith.constant 4 : index
    %c0_100 = arith.constant 0 : index
    %c0_101 = arith.constant 0 : index
    %167 = vector.load %arg8[%c4_99, %c0_100, %c0_101] : memref<5x8x16xf32, #tpu.memory_space<vmem>>, vector<1x8x16xf32>
    %168 = vector.shape_cast %167 : vector<1x8x16xf32> to vector<8x16xf32>
    %169 = vector.broadcast %32 : vector<1x128xf32> to vector<16x128xf32>
    %170 = arith.mulf %166, %169 : vector<16x128xf32>
    %cst_102 = arith.constant dense<0.000000e+00> : vector<8x128xf32>
    %171 = tpu.matmul %168, %170, %cst_102 {dimension_numbers = #tpu.dot_dimension_numbers<[1], [0], [0], [1], [0, 0, 1, 1], [], []>} : vector<8x16xf32>, vector<16x128xf32>, vector<8x128xf32> -> vector<8x128xf32>
    %172 = arith.addf %165, %171 : vector<8x128xf32>
    %c0_103 = arith.constant 0 : index
    %c0_104 = arith.constant 0 : index
    %173 = vector.load %arg9[%c0_103, %c0_104] : memref<8x1xf32, #tpu.memory_space<vmem>>, vector<8x1xf32>
    %174 = vector.broadcast %173 : vector<8x1xf32> to vector<8x128xf32>
    %175 = arith.addf %172, %174 : vector<8x128xf32>
    %176 = vector.extract_strided_slice %175 {offsets = [0, 0], sizes = [4, 128], strides = [1, 1]} : vector<8x128xf32> to vector<4x128xf32>
    %177 = arith.negf %176 : vector<4x128xf32>
    %178 = math.exp %177 : vector<4x128xf32>
    %cst_105 = arith.constant 1.000000e+00 : f32
    %179 = vector.broadcast %cst_105 : f32 to vector<4x128xf32>
    %180 = arith.addf %179, %178 : vector<4x128xf32>
    %181 = arith.divf %179, %180 : vector<4x128xf32>
    %c0_106 = arith.constant 0 : index
    %c0_107 = arith.constant 0 : index
    %182 = vector.load %arg10[%c0_106, %c0_107] : memref<4x128xf32, #tpu.memory_space<vmem>>, vector<4x128xf32>
    tpu.vector_store %arg10[%c0_106, %c0_107], %181 {strides = array<i32>} : memref<4x128xf32, #tpu.memory_space<vmem>>, vector<4x128xf32>,
    return
  }
  func.func @transform_0(%arg0: i32) -> (i32, i32) {
    %c0_i32 = arith.constant 0 : i32
    %c0_i32_0 = arith.constant 0 : i32
    return %c0_i32, %arg0 : i32, i32
  }
  func.func @transform_1(%arg0: i32) -> (i32, i32, i32) {
    %c0_i32 = arith.constant 0 : i32
    %c0_i32_0 = arith.constant 0 : i32
    %c0_i32_1 = arith.constant 0 : i32
    %c0_i32_2 = arith.constant 0 : i32
    return %c0_i32, %c0_i32_0, %c0_i32_1 : i32, i32, i32
  }
  func.func @transform_2(%arg0: i32) -> (i32, i32) {
    %c0_i32 = arith.constant 0 : i32
    %c0_i32_0 = arith.constant 0 : i32
    %c0_i32_1 = arith.constant 0 : i32
    return %c0_i32, %c0_i32_0 : i32, i32
  }
  func.func @transform_3(%arg0: i32) -> (i32, i32, i32) {
    %c0_i32 = arith.constant 0 : i32
    %c0_i32_0 = arith.constant 0 : i32
    %c0_i32_1 = arith.constant 0 : i32
    %c0_i32_2 = arith.constant 0 : i32
    return %c0_i32, %c0_i32_0, %c0_i32_1 : i32, i32, i32
  }
  func.func @transform_4(%arg0: i32) -> (i32, i32) {
    %c0_i32 = arith.constant 0 : i32
    %c0_i32_0 = arith.constant 0 : i32
    %c0_i32_1 = arith.constant 0 : i32
    return %c0_i32, %c0_i32_0 : i32, i32
  }
  func.func @transform_5(%arg0: i32) -> (i32, i32, i32) {
    %c0_i32 = arith.constant 0 : i32
    %c0_i32_0 = arith.constant 0 : i32
    %c0_i32_1 = arith.constant 0 : i32
    %c0_i32_2 = arith.constant 0 : i32
    return %c0_i32, %c0_i32_0, %c0_i32_1 : i32, i32, i32
  }
  func.func @transform_6(%arg0: i32) -> (i32, i32) {
    %c0_i32 = arith.constant 0 : i32
    %c0_i32_0 = arith.constant 0 : i32
    %c0_i32_1 = arith.constant 0 : i32
    return %c0_i32, %c0_i32_0 : i32, i32
  }
  func.func @transform_7(%arg0: i32) -> (i32, i32, i32) {
    %c0_i32 = arith.constant 0 : i32
    %c0_i32_0 = arith.constant 0 : i32
    %c0_i32_1 = arith.constant 0 : i32
    %c0_i32_2 = arith.constant 0 : i32
    return %c0_i32, %c0_i32_0, %c0_i32_1 : i32, i32, i32
  }
  func.func @transform_8(%arg0: i32) -> (i32, i32) {
    %c0_i32 = arith.constant 0 : i32
    %c0_i32_0 = arith.constant 0 : i32
    %c0_i32_1 = arith.constant 0 : i32
    return %c0_i32, %c0_i32_0 : i32, i32
  }
  func.func @transform_9(%arg0: i32) -> (i32, i32) {
    %c0_i32 = arith.constant 0 : i32
    %c0_i32_0 = arith.constant 0 : i32
    return %c0_i32, %arg0 : i32, i32
  }
}

</mosaic_0001>

<bundles_post_ra>
// kernel: _forward_impl.1
= control target key start
LH: loop header
LB: loop body
LE: loop exit
PB: predicated region body
PF: predicated region fallthrough
CT: control target
= control target key end

     0   :  { %vm67_vm0 = vcmask 64512   ;;  %s2144_s15 = smov 2   ;;  %s2145_s16 = smov 127   ;;  %v2146_v5 = vmov 0   ;;  %v32_v8 = vlaneseq  ;;  %v2149_v11 = vmov 0.0   ;;  %s2456_s0 = inlined_call_operand.vmem [shape: f32[8,128], index: 0, kind: input, shape index: {}]   ;;  %s2457_s1 = inlined_call_operand.vmem [shape: f32[5,16,8], index: 1, kind: input, shape index: {}]   ;;  %s2458_s2 = inlined_call_operand.vmem [shape: f32[16,1], index: 2, kind: input, shape index: {}]   ;;  %s2459_s3 = inlined_call_operand.vmem [shape: f32[5,16,16], index: 3, kind: input, shape index: {}]   ;;  %s2460_s4 = inlined_call_operand.vmem [shape: f32[16,1], index: 4, kind: input, shape index: {}]   ;;  %s2461_s5 = inlined_call_operand.vmem [shape: f32[5,16,16], index: 5, kind: input, shape index: {}]   ;;  %s2462_s6 = inlined_call_operand.vmem [shape: f32[16,1], index: 6, kind: input, shape index: {}]   ;;  %s2463_s7 = inlined_call_operand.vmem [shape: f32[5,8,16], index: 7, kind: input, shape index: {}]   ;;  %s2464_s8 = inlined_call_operand.vmem [shape: f32[8,1], index: 8, kind: input, shape index: {}]   ;;  %s2465_s9 = inlined_call_operand.vmem [shape: f32[4,128], index: 9, kind: output, shape index: {}]  }
   0x1   :  { %v58_v0 = vld [vmem:[%s2456_s0] sm:$0xff]  ;;  %v1868_v3 = vld [vmem:[%s2457_s1 + $0x28] sm:$0xff]  ;;  %v1877_v4 = vld [vmem:[%s2457_s1 + $0x30] sm:$0xff]  ;;  %2138 = vset.pattern.permute.xlu0 %v2146_v5  ;;  %s2147_s20 = smov 1   ;;  %s2148_s21 = smov 126   ;;  %2139 = vset.pattern.permute.xlu1 %v2146_v5  ;;  %vm524_vm5 = vcmask 130048  }
   0x2   :  { %v64_v1 = vld [vmem:[%s2457_s1] sm:$0xff]  ;;  %62 = vrot.lane.b32.xlu0 %v58_v0, %s2144_s15  ;;  %319 = vrot.lane.b32.xlu1 %v58_v0, %s2145_s16  ;;  %v498_v6 = vld [vmem:[%s2458_s2 + $0x8] sm:$0xff]  ;;  %v33_v9 = vand.u32 127, %v32_v8  ;;  %vm2150_vm6 = vmmov 0  }
   0x3   :  { %v1867_v2 = vld [vmem:[%s2457_s1 + $0x20] sm:$0xff]  ;;  %2006 = vmatprep.subr.mxu1 %v58_v0  ;;  %2003 = vmatprep.mubr.msk.f32.mxu0 %vm67_vm0, %v64_v1  ;;  %v65_v19 = vld [vmem:[%s2457_s1 + $0x8] sm:$0xff]  ;;  %v1878_v21 = vld [vmem:[%s2457_s1 + $0x38] sm:$0xff] }
   0x4   :  { %2008 = vmatprep.mubr.msk.f32.mxu1 %vm67_vm0, %v1867_v2  ;;  %2007 = vmatpush3.msra.mxu1 %v58_v0  ;;  %v497_v7 = vld [vmem:[%s2458_s2] sm:$0xff]  ;;  %v38_v10 = vand.u32 15, %v33_v9  ;;  %v1873_v22 = vld [vmem:[%s2457_s1 + $0x10] sm:$0xff]  ;;  %v1874_v27 = vld [vmem:[%s2457_s1 + $0x18] sm:$0xff] }
   0x5   :  { %2009 = vmatmul.mubr.msk.f32.vlgmr.msra.gmra.mxu1 %vm67_vm0, %v1868_v3  ;;  %v1881_v28 = vld [vmem:[%s2457_s1 + $0x40] sm:$0xff]  ;;  %v1882_v29 = vld [vmem:[%s2457_s1 + $0x48] sm:$0xff]  ;;  %v1895_v57 = vld [vmem:[%s2459_s3 + $0x30] sm:$0xff] }
   0x6   :  { %230 = vrot.lane.b32.xlu0 %v58_v0, %s2147_s20  ;;  %408 = vrot.lane.b32.xlu1 %v58_v0, %s2148_s21  ;;  %vm46_vm1 = vcmp.ge.s32.totalorder %v38_v10, 2  ;;  %vm52_vm2 = vcmp.lt.s32.totalorder %v38_v10, 15  ;;  %vm49_vm3 = vcmp.ge.s32.totalorder %v38_v10, 1  ;;  %vm55_vm4 = vcmp.lt.s32.totalorder %v38_v10, 14  ;;  %v520_v40 = vld [vmem:[%s2459_s3] sm:$0xff]  ;;  %v1886_v56 = vld [vmem:[%s2459_s3 + $0x28] sm:$0xff] }
   0x7   :  { %2018 = vmatprep.mubr.msk.f32.mxu1 %vm67_vm0, %v1877_v4  ;;  %v2231_v12 = vsel %vm46_vm1, 1.0, %v2149_v11  ;;  %v2234_v13 = vsel %vm52_vm2, 1.0, %v2149_v11  ;;  %v2239_v18 = vsel %vm49_vm3, 1.0, %v2149_v11  ;;  %v2245_v20 = vsel %vm55_vm4, 1.0, %v2149_v11  ;;  %v1885_v46 = vld [vmem:[%s2459_s3 + $0x20] sm:$0xff]  ;;  %v964_v58 = vld [vmem:[%s2460_s4 + $0x8] sm:$0xff] }
   0x8   :  { %v963_v59 = vld [vmem:[%s2460_s4] sm:$0xff]  ;;  %v521_v1 = vld [vmem:[%s2459_s3 + $0x8] sm:$0xff]  ;;  %v1891_v3 = vld [vmem:[%s2459_s3 + $0x10] sm:$0xff] }
   0x9   :  { %v1899_v9 = vld [vmem:[%s2459_s3 + $0x40] sm:$0xff] }
   0xa   :  { %506 = vperm.xlu0 %2138, %v498_v6   ;;  %501 = vperm.xlu1 %2139, %v497_v7   ;;  %v1892_v7 = vld [vmem:[%s2459_s3 + $0x18] sm:$0xff] }
  0x74   :  { %v63_v14 = vpop.permute.xlu0 %62  ;;  %v320_v15 = vpop.permute.xlu1 %319 }
  0x75   :  { %v66_v16 = vmul.f32 %v2231_v12, %v63_v14  ;;  %v324_v17 = vmul.f32 %v2234_v13, %v320_v15 }
  0x77   :  { %2001 = vmatprep.subr.mxu0 %v66_v16  ;;  %2016 = vmatprep.subr.mxu1 %v324_v17 }
  0x78   :  { %2002 = vmatpush3.msra.mxu0 %v66_v16  ;;  %v231_v23 = vpop.permute.xlu0 %230  ;;  %v409_v24 = vpop.permute.xlu1 %408  ;;  %2017 = vmatpush3.msra.mxu1 %v324_v17  ;;  %v1896_v16 = vld [vmem:[%s2459_s3 + $0x38] sm:$0xff] }
  0x79   :  { %v235_v25 = vmul.f32 %v2239_v18, %v231_v23  ;;  %2004 = vmatmul.mubr.msk.f32.vlgmr.msra.gmra.mxu0 %vm67_vm0, %v65_v19  ;;  %v413_v26 = vmul.f32 %v2245_v20, %v409_v24  ;;  %2019 = vmatmul.mubr.msk.f32.vlgmr.msra.gmra.mxu1 %vm67_vm0, %v1878_v21 }
  0x7a   :  { %2013 = vmatprep.mubr.msk.f32.mxu0 %vm67_vm0, %v1873_v22  ;;  %2030 = vmatprep.mubr.msk.f32.mxu1 %vm524_vm5, %v520_v40  ;;  %v1900_v22 = vld [vmem:[%s2459_s3 + $0x48] sm:$0xff] }
  0x7b   :  { %2011 = vmatprep.subr.mxu0 %v235_v25 }
  0x7c   :  { %2012 = vmatpush3.msra.mxu0 %v235_v25 }
  0x7d   :  { %2014 = vmatmul.mubr.msk.f32.vlgmr.msra.gmra.mxu0 %vm67_vm0, %v1874_v27  ;;  %2021 = vmatprep.subr.mxu0 %v413_v26 }
  0x7e   :  { %2022 = vmatpush3.msra.mxu0 %v413_v26  ;;  %2023 = vmatprep.mubr.msk.f32.mxu0 %vm67_vm0, %v1881_v28 }
  0x81   :  { %2024 = vmatmul.mubr.msk.f32.vlgmr.msra.gmra.mxu0 %vm67_vm0, %v1882_v29 }
  0x82   :  { %2037 = vmatprep.mubr.msk.f32.mxu0 %vm524_vm5, %v1885_v46 }
  0x85   :  { %v507_v43 = vpop.permute.xlu0 %506  ;;  %v502_v50 = vpop.permute.xlu1 %501 }
  0xc5   :  { %v2010_v30 = vpop.f32.mrf.mxu1 }
  0xc7   :  { %v221_v32 = vpop.f32.mrf.mxu1 }
 0x139   :  { %v2005_v31 = vpop.f32.mrf.mxu0  ;;  %v2020_v36 = vpop.f32.mrf.mxu1 }
 0x13a   :  { %v227_v34 = vadd.f32 %v2010_v30, %v2005_v31 }
 0x13b   :  { %v140_v33 = vpop.f32.mrf.mxu0  ;;  %v397_v44 = vpop.f32.mrf.mxu1 }
 0x13c   :  { %v222_v37 = vadd.f32 %v221_v32, %v140_v33 }
 0x13d   :  { %v2015_v35 = vpop.f32.mrf.mxu0 }
 0x13e   :  { %v318_v38 = vadd.f32 %v2015_v35, %v227_v34  ;;  %v986_v34 = vld [vmem:[%s2461_s5] sm:$0xff] }
 0x13f   :  { %v308_v39 = vpop.f32.mrf.mxu0 }
 0x140   :  { %v317_v41 = vadd.f32 %v308_v39, %v222_v37  ;;  %v407_v42 = vadd.f32 %v2020_v36, %v318_v38  ;;  %v1903_v38 = vld [vmem:[%s2461_s5 + $0x20] sm:$0xff] }
 0x141   :  { %v2025_v45 = vpop.f32.mrf.mxu0 }
 0x142   :  { %v406_v47 = vadd.f32 %v397_v44, %v317_v41  ;;  %v496_v48 = vadd.f32 %v2025_v45, %v407_v42 }
 0x143   :  { %v486_v49 = vpop.f32.mrf.mxu0 }
 0x144   :  { %v495_v51 = vadd.f32 %v486_v49, %v406_v47  ;;  %v510_v52 = vadd.f32 %v507_v43, %v496_v48  ;;  %v1904_v49 = vld [vmem:[%s2461_s5 + $0x28] sm:$0xff] }
 0x146   :  { %v512_v53 = vmax.f32 %v510_v52, 0.0  ;;  %v509_v54 = vadd.f32 %v502_v50, %v495_v51  ;;  %v1913_v50 = vld [vmem:[%s2461_s5 + $0x30] sm:$0xff]  ;;  %v1429_v51 = vld [vmem:[%s2462_s6 + $0x8] sm:$0xff]  ;;  %v1428_v52 = vld [vmem:[%s2462_s6] sm:$0xff] }
 0x148   :  { %v511_v55 = vmax.f32 %v509_v54, 0.0  ;;  %518 = vrot.lane.b32.xlu1 %v512_v53, %s2144_s15  ;;  %2033 = vmatprep.subr.mxu0 %v512_v53 }
 0x149   :  { %2034 = vmatpush3.msra.mxu0 %v512_v53 }
 0x14a   :  { %516 = vrot.lane.b32.xlu0 %v511_v55, %s2144_s15  ;;  %2035 = vmatprep.subr.mxu0 %v511_v55 }
 0x14b   :  { %2036 = vmatpush3.msra.mxu0 %v511_v55 }
 0x14c   :  { %689 = vrot.lane.b32.xlu1 %v512_v53, %s2147_s20  ;;  %2038 = vmatmul.mubr.msk.f32.vlgmr.msra.gmra.mxu0 %vm524_vm5, %v1886_v56 }
 0x14d   :  { %2051 = vmatprep.mubr.msk.f32.mxu0 %vm524_vm5, %v1895_v57 }
 0x14e   :  { %687 = vrot.lane.b32.xlu0 %v511_v55, %s2147_s20 }
 0x150   :  { %781 = vrot.lane.b32.xlu1 %v512_v53, %s2145_s16 }
 0x152   :  { %779 = vrot.lane.b32.xlu0 %v511_v55, %s2145_s16 }
 0x154   :  { %873 = vrot.lane.b32.xlu1 %v512_v53, %s2148_s21 }
 0x156   :  { %871 = vrot.lane.b32.xlu0 %v511_v55, %s2148_s21 }
 0x158   :  { %972 = vperm.xlu1 %2139, %v964_v58   ;;  %v987_v58 = vld [vmem:[%s2461_s5 + $0x8] sm:$0xff] }
 0x15a   :  { %967 = vperm.xlu0 %2138, %v963_v59  }
 0x1ba   :  { %v519_v60 = vpop.permute.xlu1 %518 }
 0x1bb   :  { %v523_v61 = vmul.f32 %v2231_v12, %v519_v60  ;;  %v1909_v60 = vld [vmem:[%s2461_s5 + $0x10] sm:$0xff] }
 0x1bc   :  { %v517_v62 = vpop.permute.xlu0 %516 }
 0x1bd   :  { %v522_v63 = vmul.f32 %v2231_v12, %v517_v62  ;;  %2026 = vmatprep.subr.mxu1 %v523_v61 }
 0x1be   :  { %2027 = vmatpush3.msra.mxu1 %v523_v61  ;;  %v690_v0 = vpop.permute.xlu1 %689 }
 0x1bf   :  { %v695_v2 = vmul.f32 %v2239_v18, %v690_v0  ;;  %2028 = vmatprep.subr.mxu1 %v522_v63  ;;  %v1910_v0 = vld [vmem:[%s2461_s5 + $0x18] sm:$0xff] }
 0x1c0   :  { %2029 = vmatpush3.msra.mxu1 %v522_v63  ;;  %v688_v4 = vpop.permute.xlu0 %687 }
 0x1c1   :  { %v694_v5 = vmul.f32 %v2239_v18, %v688_v4  ;;  %2040 = vmatprep.subr.mxu1 %v695_v2  ;;  %2031 = vmatmul.mubr.msk.f32.vlgmr.msra.gmra.mxu1 %vm524_vm5, %v521_v1 }
 0x1c2   :  { %v782_v6 = vpop.permute.xlu1 %781  ;;  %2041 = vmatpush3.msra.mxu1 %v695_v2  ;;  %2044 = vmatprep.mubr.msk.f32.mxu1 %vm524_vm5, %v1891_v3  ;;  %v1917_v2 = vld [vmem:[%s2461_s5 + $0x40] sm:$0xff] }
 0x1c3   :  { %v787_v8 = vmul.f32 %v2234_v13, %v782_v6  ;;  %2042 = vmatprep.subr.mxu1 %v694_v5  ;;  %v1914_v6 = vld [vmem:[%s2461_s5 + $0x38] sm:$0xff] }
 0x1c4   :  { %2043 = vmatpush3.msra.mxu1 %v694_v5  ;;  %v780_v10 = vpop.permute.xlu0 %779 }
 0x1c5   :  { %v786_v14 = vmul.f32 %v2234_v13, %v780_v10  ;;  %2047 = vmatprep.subr.mxu0 %v787_v8  ;;  %2045 = vmatmul.mubr.msk.f32.vlgmr.msra.gmra.mxu1 %vm524_vm5, %v1892_v7  ;;  %v1918_v10 = vld [vmem:[%s2461_s5 + $0x48] sm:$0xff] }
 0x1c6   :  { %v874_v15 = vpop.permute.xlu1 %873  ;;  %2048 = vmatpush3.msra.mxu0 %v787_v8  ;;  %2058 = vmatprep.mubr.msk.f32.mxu1 %vm524_vm5, %v1899_v9 }
 0x1c7   :  { %v879_v17 = vmul.f32 %v2245_v20, %v874_v15  ;;  %2049 = vmatprep.subr.mxu0 %v786_v14 }
 0x1c8   :  { %v872_v19 = vpop.permute.xlu0 %871  ;;  %2050 = vmatpush3.msra.mxu0 %v786_v14 }
 0x1c9   :  { %v878_v21 = vmul.f32 %v2245_v20, %v872_v19  ;;  %2052 = vmatmul.mubr.msk.f32.vlgmr.msra.gmra.mxu0 %vm524_vm5, %v1896_v16  ;;  %2054 = vmatprep.subr.mxu1 %v879_v17 }
 0x1ca   :  { %2055 = vmatpush3.msra.mxu1 %v879_v17  ;;  %2065 = vmatprep.mubr.msk.f32.mxu0 %vm524_vm5, %v986_v34 }
 0x1cb   :  { %2056 = vmatprep.subr.mxu1 %v878_v21 }
 0x1cc   :  { %2057 = vmatpush3.msra.mxu1 %v878_v21 }
 0x1cd   :  { %2059 = vmatmul.mubr.msk.f32.vlgmr.msra.gmra.mxu1 %vm524_vm5, %v1900_v22 }
 0x1ce   :  { %2072 = vmatprep.mubr.msk.f32.mxu1 %vm524_vm5, %v1903_v38 }
 0x1d3   :  { %v973_v41 = vpop.permute.xlu1 %972 }
 0x1d5   :  { %v968_v45 = vpop.permute.xlu0 %967 }
 0x20c   :  { %v2039_v24 = vpop.f32.mrf.mxu0 }
 0x20e   :  { %v678_v27 = vpop.f32.mrf.mxu0 }
 0x281   :  { %v2032_v23 = vpop.f32.mrf.mxu1 }
 0x282   :  { %v684_v26 = vadd.f32 %v2039_v24, %v2032_v23 }
 0x283   :  { %v597_v25 = vpop.f32.mrf.mxu1 }
 0x284   :  { %v679_v29 = vadd.f32 %v678_v27, %v597_v25 }
 0x285   :  { %v2046_v28 = vpop.f32.mrf.mxu1 }
 0x286   :  { %v778_v30 = vadd.f32 %v2046_v28, %v684_v26 }
 0x287   :  { %v768_v31 = vpop.f32.mrf.mxu1 }
 0x288   :  { %v777_v35 = vadd.f32 %v768_v31, %v679_v29 }
 0x289   :  { %v2053_v32 = vpop.f32.mrf.mxu0 }
 0x28a   :  { %v870_v36 = vadd.f32 %v2053_v32, %v778_v30 }
 0x28b   :  { %v860_v33 = vpop.f32.mrf.mxu0 }
 0x28c   :  { %v869_v39 = vadd.f32 %v860_v33, %v777_v35 }
 0x28d   :  { %v2060_v37 = vpop.f32.mrf.mxu1 }
 0x28e   :  { %v962_v40 = vadd.f32 %v2060_v37, %v870_v36 }
 0x28f   :  { %v952_v42 = vpop.f32.mrf.mxu1 }
 0x290   :  { %v976_v43 = vadd.f32 %v973_v41, %v962_v40  ;;  %v961_v44 = vadd.f32 %v952_v42, %v869_v39  ;;  %v1921_v40 = vld [vmem:[%s2463_s7 + $0x10] sm:$0xff]  ;;  %v1845_v41 = vld [vmem:[%s2464_s8] sm:$0xff] }
 0x292   :  { %v978_v46 = vmax.f32 %v976_v43, 0.0  ;;  %v975_v47 = vadd.f32 %v968_v45, %v961_v44 }
 0x294   :  { %v977_v48 = vmax.f32 %v975_v47, 0.0  ;;  %984 = vrot.lane.b32.xlu1 %v978_v46, %s2144_s15  ;;  %2068 = vmatprep.subr.mxu1 %v978_v46 }
 0x295   :  { %2069 = vmatpush3.msra.mxu1 %v978_v46 }
 0x296   :  { %982 = vrot.lane.b32.xlu0 %v977_v48, %s2144_s15  ;;  %2070 = vmatprep.subr.mxu1 %v977_v48 }
 0x297   :  { %2071 = vmatpush3.msra.mxu1 %v977_v48 }
 0x298   :  { %1154 = vrot.lane.b32.xlu1 %v978_v46, %s2147_s20  ;;  %2073 = vmatmul.mubr.msk.f32.vlgmr.msra.gmra.mxu1 %vm524_vm5, %v1904_v49 }
 0x299   :  { %2086 = vmatprep.mubr.msk.f32.mxu1 %vm524_vm5, %v1913_v50 }
 0x29a   :  { %1152 = vrot.lane.b32.xlu0 %v977_v48, %s2147_s20 }
 0x29c   :  { %1246 = vrot.lane.b32.xlu1 %v978_v46, %s2145_s16 }
 0x29e   :  { %1244 = vrot.lane.b32.xlu0 %v977_v48, %s2145_s16 }
 0x2a0   :  { %1338 = vrot.lane.b32.xlu1 %v978_v46, %s2148_s21  ;;  %v1450_v46 = vld [vmem:[%s2463_s7] sm:$0xff] }
 0x2a2   :  { %1336 = vrot.lane.b32.xlu0 %v977_v48, %s2148_s21 }
 0x2a4   :  { %1437 = vperm.xlu1 %2139, %v1429_v51  }
 0x2a6   :  { %1432 = vperm.xlu0 %2138, %v1428_v52  }
 0x306   :  { %v985_v53 = vpop.permute.xlu1 %984 }
 0x307   :  { %v989_v54 = vmul.f32 %v2231_v12, %v985_v53 }
 0x308   :  { %v983_v55 = vpop.permute.xlu0 %982 }
 0x309   :  { %v988_v56 = vmul.f32 %v2231_v12, %v983_v55  ;;  %2061 = vmatprep.subr.mxu0 %v989_v54 }
 0x30a   :  { %2062 = vmatpush3.msra.mxu0 %v989_v54  ;;  %v1155_v57 = vpop.permute.xlu1 %1154  ;;  %v1926_v54 = vld [vmem:[%s2463_s7 + $0x18] sm:$0xff] }
 0x30b   :  { %v1160_v59 = vmul.f32 %v2239_v18, %v1155_v57  ;;  %2063 = vmatprep.subr.mxu0 %v988_v56 }
 0x30c   :  { %2064 = vmatpush3.msra.mxu0 %v988_v56  ;;  %v1153_v61 = vpop.permute.xlu0 %1152 }
 0x30d   :  { %v1159_v62 = vmul.f32 %v2239_v18, %v1153_v61  ;;  %2075 = vmatprep.subr.mxu0 %v1160_v59  ;;  %2066 = vmatmul.mubr.msk.f32.vlgmr.msra.gmra.mxu0 %vm524_vm5, %v987_v58 }
 0x30e   :  { %v1247_v63 = vpop.permute.xlu1 %1246  ;;  %2076 = vmatpush3.msra.mxu0 %v1160_v59  ;;  %2079 = vmatprep.mubr.msk.f32.mxu0 %vm524_vm5, %v1909_v60 }
 0x30f   :  { %v1252_v1 = vmul.f32 %v2234_v13, %v1247_v63  ;;  %2077 = vmatprep.subr.mxu0 %v1159_v62 }
 0x310   :  { %2078 = vmatpush3.msra.mxu0 %v1159_v62  ;;  %v1245_v3 = vpop.permute.xlu0 %1244 }
 0x311   :  { %v1251_v4 = vmul.f32 %v2234_v13, %v1245_v3  ;;  %2082 = vmatprep.subr.mxu1 %v1252_v1  ;;  %2080 = vmatmul.mubr.msk.f32.vlgmr.msra.gmra.mxu0 %vm524_vm5, %v1910_v0 }
 0x312   :  { %v1339_v5 = vpop.permute.xlu1 %1338  ;;  %2083 = vmatpush3.msra.mxu1 %v1252_v1  ;;  %2093 = vmatprep.mubr.msk.f32.mxu0 %vm524_vm5, %v1917_v2 }
 0x313   :  { %v1344_v7 = vmul.f32 %v2245_v20, %v1339_v5  ;;  %2084 = vmatprep.subr.mxu1 %v1251_v4 }
 0x314   :  { %v1337_v8 = vpop.permute.xlu0 %1336  ;;  %2085 = vmatpush3.msra.mxu1 %v1251_v4 }
 0x315   :  { %v1343_v9 = vmul.f32 %v2245_v20, %v1337_v8  ;;  %2087 = vmatmul.mubr.msk.f32.vlgmr.msra.gmra.mxu1 %vm524_vm5, %v1914_v6  ;;  %2089 = vmatprep.subr.mxu0 %v1344_v7 }
 0x316   :  { %2090 = vmatpush3.msra.mxu0 %v1344_v7  ;;  %2096 = vmatprep.subr.mxu1 %v2149_v11 }
 0x317   :  { %2091 = vmatprep.subr.mxu0 %v1343_v9  ;;  %2100 = vmatprep.mubr.msk.f32.mxu1 %vm2150_vm6, %v2149_v11 }
 0x318   :  { %2092 = vmatpush3.msra.mxu0 %v1343_v9 }
 0x319   :  { %2094 = vmatmul.mubr.msk.f32.vlgmr.msra.gmra.mxu0 %vm524_vm5, %v1918_v10  ;;  %2103 = vmatprep.subr.mxu0 %v2149_v11 }
 0x31a   :  { %2107 = vmatprep.mubr.msk.f32.mxu0 %vm2150_vm6, %v2149_v11 }
 0x31f   :  { %v1438_v32 = vpop.permute.xlu1 %1437 }
 0x321   :  { %v1433_v36 = vpop.permute.xlu0 %1432 }
 0x358   :  { %v2074_v15 = vpop.f32.mrf.mxu1 }
 0x35a   :  { %v1143_v19 = vpop.f32.mrf.mxu1 }
 0x3cd   :  { %v2067_v14 = vpop.f32.mrf.mxu0 }
 0x3ce   :  { %v1149_v17 = vadd.f32 %v2074_v15, %v2067_v14 }
 0x3cf   :  { %v1062_v16 = vpop.f32.mrf.mxu0 }
 0x3d0   :  { %v1144_v22 = vadd.f32 %v1143_v19, %v1062_v16 }
 0x3d1   :  { %v2081_v21 = vpop.f32.mrf.mxu0 }
 0x3d2   :  { %v1243_v23 = vadd.f32 %v2081_v21, %v1149_v17 }
 0x3d3   :  { %v1233_v24 = vpop.f32.mrf.mxu0 }
 0x3d4   :  { %v1242_v27 = vadd.f32 %v1233_v24, %v1144_v22 }
 0x3d5   :  { %v2088_v25 = vpop.f32.mrf.mxu1 }
 0x3d6   :  { %v1335_v28 = vadd.f32 %v2088_v25, %v1243_v23 }
 0x3d7   :  { %v1325_v26 = vpop.f32.mrf.mxu1 }
 0x3d8   :  { %v1334_v30 = vadd.f32 %v1325_v26, %v1242_v27 }
 0x3d9   :  { %v2095_v29 = vpop.f32.mrf.mxu0 }
 0x3da   :  { %v1427_v31 = vadd.f32 %v2095_v29, %v1335_v28 }
 0x3db   :  { %v1417_v33 = vpop.f32.mrf.mxu0 }
 0x3dc   :  { %v1441_v34 = vadd.f32 %v1438_v32, %v1427_v31  ;;  %v1426_v35 = vadd.f32 %v1417_v33, %v1334_v30 }
 0x3de   :  { %v1443_v37 = vmax.f32 %v1441_v34, 0.0  ;;  %v1440_v38 = vadd.f32 %v1433_v36, %v1426_v35 }
 0x3e0   :  { %v1442_v39 = vmax.f32 %v1440_v38, 0.0  ;;  %1448 = vrot.lane.b32.xlu1 %v1443_v37, %s2144_s15  ;;  %2104 = vmatpush3.msra.mxu0 %v1443_v37 }
 0x3e1   :  { %2105 = vmatprep.subr.mxu0 %v2149_v11 }
 0x3e2   :  { %1446 = vrot.lane.b32.xlu0 %v1442_v39, %s2144_s15  ;;  %2106 = vmatpush3.msra.mxu0 %v1442_v39 }
 0x3e3   :  { %2117 = vmatprep.subr.mxu0 %v2149_v11  ;;  %2108 = vmatmul.mubr.msk.f32.vlgmr.msra.gmra.mxu0 %vm524_vm5, %v1921_v40 }
 0x3e4   :  { %1601 = vrot.lane.b32.xlu1 %v1443_v37, %s2147_s20  ;;  %2121 = vmatprep.mubr.msk.f32.mxu0 %vm2150_vm6, %v2149_v11 }
 0x3e6   :  { %1599 = vrot.lane.b32.xlu0 %v1442_v39, %s2147_s20 }
 0x3e8   :  { %1683 = vrot.lane.b32.xlu1 %v1443_v37, %s2145_s16 }
 0x3ea   :  { %1681 = vrot.lane.b32.xlu0 %v1442_v39, %s2145_s16 }
 0x3ec   :  { %1765 = vrot.lane.b32.xlu1 %v1443_v37, %s2148_s21 }
 0x3ee   :  { %1763 = vrot.lane.b32.xlu0 %v1442_v39, %s2148_s21 }
 0x3f0   :  { %1848 = vperm.xlu1 %2139, %v1845_v41  }
 0x452   :  { %v1449_v42 = vpop.permute.xlu1 %1448 }
 0x453   :  { %v1452_v43 = vmul.f32 %v2231_v12, %v1449_v42 }
 0x454   :  { %v1447_v44 = vpop.permute.xlu0 %1446 }
 0x455   :  { %v1451_v45 = vmul.f32 %v2231_v12, %v1447_v44  ;;  %2097 = vmatpush3.msra.mxu1 %v1452_v43  ;;  %v1924_v12 = vld [vmem:[%s2463_s7 + $0x8] sm:$0xff] }
 0x456   :  { %2098 = vmatprep.subr.mxu1 %v2149_v11  ;;  %v1602_v47 = vpop.permute.xlu1 %1601 }
 0x457   :  { %v1606_v48 = vmul.f32 %v2239_v18, %v1602_v47  ;;  %2099 = vmatpush3.msra.mxu1 %v1451_v45 }
 0x458   :  { %2110 = vmatprep.subr.mxu1 %v2149_v11  ;;  %v1600_v49 = vpop.permute.xlu0 %1599  ;;  %2101 = vmatmul.mubr.msk.f32.vlgmr.msra.gmra.mxu1 %vm524_vm5, %v1450_v46 }
 0x459   :  { %v1605_v50 = vmul.f32 %v2239_v18, %v1600_v49  ;;  %2111 = vmatpush3.msra.mxu1 %v1606_v48  ;;  %2114 = vmatprep.mubr.msk.f32.mxu1 %vm2150_vm6, %v2149_v11 }
 0x45a   :  { %v1684_v51 = vpop.permute.xlu1 %1683  ;;  %2112 = vmatprep.subr.mxu1 %v2149_v11 }
 0x45b   :  { %v1688_v52 = vmul.f32 %v2234_v13, %v1684_v51  ;;  %2113 = vmatpush3.msra.mxu1 %v1605_v50 }
 0x45c   :  { %v1682_v53 = vpop.permute.xlu0 %1681  ;;  %2115 = vmatmul.mubr.msk.f32.vlgmr.msra.gmra.mxu1 %vm524_vm5, %v1924_v12  ;;  %2124 = vmatprep.subr.mxu1 %v2149_v11 }
 0x45d   :  { %v1687_v18 = vmul.f32 %v2234_v13, %v1682_v53  ;;  %2118 = vmatpush3.msra.mxu0 %v1688_v52  ;;  %2128 = vmatprep.mubr.msk.f32.mxu1 %vm2150_vm6, %v2149_v11  ;;  %v1928_v13 = vld [vmem:[%s2463_s7 + $0x20] sm:$0xff] }
 0x45e   :  { %v1766_v55 = vpop.permute.xlu1 %1765  ;;  %2119 = vmatprep.subr.mxu0 %v2149_v11 }
 0x45f   :  { %v1770_v56 = vmul.f32 %v2245_v20, %v1766_v55  ;;  %2120 = vmatpush3.msra.mxu0 %v1687_v18 }
 0x460   :  { %v1764_v57 = vpop.permute.xlu0 %1763  ;;  %2122 = vmatmul.mubr.msk.f32.vlgmr.msra.gmra.mxu0 %vm524_vm5, %v1926_v54 }
 0x461   :  { %v1769_v58 = vmul.f32 %v2245_v20, %v1764_v57  ;;  %2125 = vmatpush3.msra.mxu1 %v1770_v56 }
 0x462   :  { %2126 = vmatprep.subr.mxu1 %v2149_v11 }
 0x463   :  { %2127 = vmatpush3.msra.mxu1 %v1769_v58 }
 0x464   :  { %2129 = vmatmul.mubr.msk.f32.vlgmr.msra.gmra.mxu1 %vm524_vm5, %v1928_v13 }
 0x46b   :  { %v1849_v7 = vpop.permute.xlu1 %1848 }
 0x4a3   :  { %v1595_v59 = vpop.f32.mrf.mxu0 }
 0x4a5   :  { %v2109_v60 = vpop.f32.mrf.mxu0 }
 0x518   :  { %v1522_v61 = vpop.f32.mrf.mxu1 }
 0x519   :  { %v1596_v63 = vadd.f32 %v1595_v59, %v1522_v61 }
 0x51a   :  { %v2102_v62 = vpop.f32.mrf.mxu1 }
 0x51c   :  { %v1676_v0 = vpop.f32.mrf.mxu1 }
 0x51d   :  { %v1680_v2 = vadd.f32 %v1676_v0, %v1596_v63 }
 0x51e   :  { %v2116_v1 = vpop.f32.mrf.mxu1 }
 0x520   :  { %v1758_v3 = vpop.f32.mrf.mxu0 }
 0x521   :  { %v1762_v4 = vadd.f32 %v1758_v3, %v1680_v2 }
 0x522   :  { %v2123_v20 = vpop.f32.mrf.mxu0 }
 0x524   :  { %v1840_v5 = vpop.f32.mrf.mxu1 }
 0x525   :  { %v1844_v6 = vadd.f32 %v1840_v5, %v1762_v4 }
 0x526   :  { %v2130_v8 = vpop.f32.mrf.mxu1 }
 0x527   :  { %v1851_v9 = vadd.f32 %v1849_v7, %v1844_v6 }
 0x529   :  { %v1930_v11 = vmul.f32 -1.442695, %v1851_v9 }
 0x52b   :  { %2140 = vpow2.f32 %v1930_v11 }
 0x538   :  { %v2141_v10 = vpop.eup %2140 }
 0x539   :  { %v1855_v14 = vadd.f32 1.0, %v2141_v10 }
 0x53b   :  { %2142 = vrcp.f32 %v1855_v14 }
 0x548   :  { %v2143_v15 = vpop.eup %2142 }
 0x549   :  { %1858 = vst [vmem:[%s2465_s9] sm:$0xf] %v2143_v15 }

</bundles_post_ra>
